<compile_context>
chip_gen: v7x
topology: tpu7x:2x2x1
jax: 0.10.0
libtpu: 0.0.40
codegen_flags: <defaults>
</compile_context>

<pallas_src>
import functools

import jax
import jax.numpy as jnp
from jax.experimental import pallas as pl
from jax.experimental.pallas import tpu as pltpu

NORM_EPS = 1e-12  # F.normalize default eps


def _round_up(x, m):
    return ((x + m - 1) // m) * m


def _vq_kernel(z_ref, wt_ref, w_ref, zq_ref, idx_ref, counts_ref, err_ref,
               *, rem):
    """Quantize a (tN, D) row block against the full (V, D) codebook.

    Outputs (all block-private, so the grid axis is "parallel"):
      zq_ref     (tN, D)    selected codebook rows
      idx_ref    (1, 1, tN) argmin indices (lane-dense store)
      counts_ref (1, 1, V)  this block's codebook usage counts
      err_ref    (1, 1, 1)  this block's squared-error partial sum
    `rem` (compile-time) = number of valid rows in the last block (0 = all).
    """
    z = z_ref[...].astype(jnp.float32)            # (tN, D)
    wt = wt_ref[...].astype(jnp.float32)          # (D, V) lane-dense codebook^T
    w = w_ref[...].astype(jnp.float32)            # (V, D) codebook
    tN, D = z.shape
    V = w.shape[0]

    # ||z_i||^2 and the clamped norm (F.normalize denominator).
    row_sq = jnp.sum(z * z, axis=-1, keepdims=True)          # (tN, 1)
    clamped = jnp.maximum(jnp.sqrt(row_sq), NORM_EPS)         # (tN, 1)

    # ||w_j||^2 — kept so the argmin matches the reference distance exactly
    # even if the codebook is not perfectly unit-norm.  Cheap lane-dense work.
    wsq = jnp.sum(wt * wt, axis=0, keepdims=True)             # (1, V)

    # Reference index:  argmin_j |zn - w_j|^2 with zn = z / clamped
    #                == argmax_j ( 2<z, w_j>/clamped - |w_j|^2 )
    #                == argmax_j ( <z, w_j> - 0.5*clamped*|w_j|^2 )
    # (per-row positive scaling is argmax-invariant), so zn is never built.
    dots = jax.lax.dot_general(z, wt, (((1,), (0,)), ((), ())),
                               preferred_element_type=jnp.float32)   # (tN, V)
    score = dots - 0.5 * (clamped * wsq)                      # (tN, V)
    idx = jnp.argmax(score, axis=1)                           # (tN,)
    idx_ref[...] = idx.astype(jnp.int32).reshape(1, 1, tN)

    # Gather codebook rows with a one-hot matmul (MXU; 0/1 lhs keeps it exact).
    onehot = (jax.lax.broadcasted_iota(jnp.int32, (tN, V), 1)
              == idx[:, None]).astype(jnp.float32)            # (tN, V)
    zq = jnp.dot(onehot, w, preferred_element_type=jnp.float32)   # (tN, D)
    zq_ref[...] = zq.astype(zq_ref.dtype)

    # Per-row |w_idx - zn|^2 via the same identity:
    #   = |zn|^2 + |w_idx|^2 - 2<z, w_idx>/clamped
    #   = row_sq/clamped^2 - 2*max(score)/clamped
    score_max = jnp.max(score, axis=1, keepdims=True)          # (tN, 1)
    inv = 1.0 / clamped                                        # exact divide
    err_rows = row_sq * inv * inv - 2.0 * score_max * inv      # (tN, 1)

    counts_ref[...] = jnp.sum(onehot, axis=0).reshape(1, 1, V)
    err_ref[...] = jnp.sum(err_rows).reshape(1, 1, 1)

    if rem:
        # Only the final block can contain out-of-bounds rows (garbage reads).
        # Their z_q / idx stores are masked / discarded anyway; only fix stats.
        @pl.when(pl.program_id(0) == pl.num_programs(0) - 1)
        def _():
            lane_row = jax.lax.broadcasted_iota(jnp.int32, (1, tN), 1)
            valid_lane = (lane_row < rem).astype(jnp.float32)       # (1, tN)
            counts_ref[...] = jnp.dot(
                valid_lane, onehot,
                preferred_element_type=jnp.float32).reshape(1, 1, V)
            sub_row = jax.lax.broadcasted_iota(jnp.int32, (tN, 1), 0)
            # where (not *): garbage rows may hold NaN/Inf and must not leak.
            err_masked = jnp.where(sub_row < rem, err_rows, 0.0)
            err_ref[...] = jnp.sum(err_masked).reshape(1, 1, 1)


def _quantize_pallas(z_flat, weight, *, block_n):
    N, D = z_flat.shape
    V = weight.shape[0]

    # Row tile: as large as comfortably fits VMEM (kernel is HBM-bandwidth
    # bound), but never larger than the problem for tiny inputs so the block
    # never exceeds the array extent.  Ragged tails are handled by Pallas
    # boundary masking — no wrapper pad / slice (no extra HBM round trips).
    block_n_eff = min(block_n, max(8, (N // 8) * 8))
    grid_n = pl.cdiv(N, block_n_eff)
    rem = N % block_n_eff      # valid rows in the last (possibly ragged) block

    # Lane-dense (D, V) copy of the codebook for the distance matmul; the
    # original (V, D) is still used for the one-hot gather.  32 KiB total.
    weight_t = jnp.transpose(weight)

    # Rough lane-padded VMEM footprint (z/z_q double buffers + dots/one-hot/
    # score temps).  The default scoped VMEM (16 MiB v5e, 32 MiB v6e/v7x)
    # already covers the default tile; only raise the limit for larger tiles,
    # and never request more than a v7x-safe 48 MiB.
    est_bytes = 10 * block_n_eff * 128 * 4
    vmem_limit = None if est_bytes <= (14 << 20) else min(est_bytes, 48 << 20)

    kernel = functools.partial(_vq_kernel, rem=rem)

    zq, idx, counts, err = pl.pallas_call(
        kernel,
        out_shape=(
            jax.ShapeDtypeStruct((N, D), z_flat.dtype),
            jax.ShapeDtypeStruct((grid_n, 1, block_n_eff), jnp.int32),
            jax.ShapeDtypeStruct((grid_n, 1, V), jnp.float32),
            jax.ShapeDtypeStruct((grid_n, 1, 1), jnp.float32),
        ),
        grid_spec=pltpu.PrefetchScalarGridSpec(
            num_scalar_prefetch=0,
            grid=(grid_n,),
            in_specs=[
                pl.BlockSpec((block_n_eff, D), lambda i: (i, 0)),   # z rows
                pl.BlockSpec((D, V), lambda i: (0, 0)),             # codebook^T
                pl.BlockSpec((V, D), lambda i: (0, 0)),             # codebook
            ],
            out_specs=[
                pl.BlockSpec((block_n_eff, D), lambda i: (i, 0)),        # z_q
                pl.BlockSpec((1, 1, block_n_eff), lambda i: (i, 0, 0)),  # idx
                pl.BlockSpec((1, 1, V), lambda i: (i, 0, 0)),            # counts
                pl.BlockSpec((1, 1, 1), lambda i: (i, 0, 0)),            # sq-err
            ],
        ),
        compiler_params=pltpu.CompilerParams(
            # Every block writes distinct outputs -> row-block axis is safe to
            # shard across TensorCores (v7x megacore).
            # TODO(synk): if a v7x profile shows one core idle, switch this
            # axis to pltpu.CORE_PARALLEL.
            dimension_semantics=("parallel",),
            vmem_limit_bytes=vmem_limit),
    )(z_flat, weight_t, weight)

    idx_flat = idx.reshape(-1)[:N]
    counts_total = jnp.sum(counts, axis=(0, 1))   # (V,)
    sq_err = jnp.sum(err)
    return zq, idx_flat, counts_total, sq_err


def norm_ema_vq_forward(z, weight, cluster_size, *, beta, decay, block_n=2048):
    """Eval-mode forward of NormEMAVectorQuantizer.

    z: (B, H, W, D) channels-last, D == embed_dim
    weight: (n_embed, D) codebook (l2-normalized as in __init__)
    cluster_size: (n_embed,) usage statistic buffer

    Returns (z_q, loss, encoding_indices, new_cluster_size).
    """
    B, H, W, D = z.shape
    N = B * H * W
    z_flat = z.reshape(N, D)

    zq_flat, idx, counts, sq_err = _quantize_pallas(
        z_flat, weight, block_n=block_n)

    z_q = zq_flat.reshape(z.shape)
    # loss = beta * mse(z_q, l2norm(z)); straight-through value == z_q
    loss = beta * (sq_err / (N * D))
    # PyTorch runs ema_inplace(cluster_size, ...) on the eval path; replicated
    # functionally (not in-place).
    new_cluster_size = cluster_size * decay + (1.0 - decay) * counts
    return z_q, loss, idx, new_cluster_size


def _reference(z, weight, cluster_size, beta, decay):
    # pure-JAX reference mirroring the PyTorch forward (eval mode)
    zn = z / jnp.maximum(
        jnp.sqrt(jnp.sum(z * z, axis=-1, keepdims=True)), NORM_EPS)
    zf = zn.reshape(-1, z.shape[-1])
    d = (jnp.sum(zf**2, axis=1, keepdims=True)
         + jnp.sum(weight**2, axis=1)
         - 2.0 * zf @ weight.T)
    idx = jnp.argmin(d, axis=1)
    zq = weight[idx].reshape(z.shape)
    counts = jnp.sum(jax.nn.one_hot(idx, weight.shape[0], dtype=z.dtype), axis=0)
    loss = beta * jnp.mean((zq - zn) ** 2)
    new_cs = cluster_size * decay + (1.0 - decay) * counts
    return zq, loss, idx, new_cs


def _check(out, ref):
    z_q, loss, idx, new_cs = out
    zq_r, loss_r, idx_r, cs_r = ref
    assert jnp.array_equal(idx, idx_r), "indices mismatch"
    assert jnp.allclose(z_q, zq_r, atol=1e-5), "z_q mismatch"
    assert jnp.allclose(loss, loss_r, atol=1e-6), "loss mismatch"
    assert jnp.allclose(new_cs, cs_r, atol=1e-6), "cluster_size mismatch"


if __name__ == "__main__":
    # NormEMAVectorQuantizer(n_embed=128, embed_dim=32, beta=1.0, decay=0.99,
    #                        kmeans_init=False)  -> weight = l2norm(randn(V, D))
    n_embed, embed_dim = 128, 32
    beta, decay = 1.0, 0.99

    key = jax.random.PRNGKey(0)
    kz, kw, kz2 = jax.random.split(key, 3)
    w = jax.random.normal(kw, (n_embed, embed_dim), dtype=jnp.float32)
    weight = w / jnp.maximum(
        jnp.sqrt(jnp.sum(w * w, axis=-1, keepdims=True)), NORM_EPS)
    cluster_size = jnp.zeros((n_embed,), dtype=jnp.float32)

    fwd = jax.jit(functools.partial(
        norm_ema_vq_forward, beta=beta, decay=decay))

    # Case 1: B=2, H=W=4 -> N=32 (single full block, no masking)
    z = jax.random.normal(kz, (2, 4, 4, embed_dim), dtype=jnp.float32)
    out = fwd(z, weight, cluster_size)
    jax.block_until_ready(out)
    _check(out, _reference(z, weight, cluster_size, beta, decay))

    # Case 2: B=2, H=W=5 -> N=50 (ragged last block: grid=2, 2 valid tail rows)
    z2 = jax.random.normal(kz2, (2, 5, 5, embed_dim), dtype=jnp.float32)
    out2 = fwd(z2, weight, cluster_size)
    jax.block_until_ready(out2)
    _check(out2, _reference(z2, weight, cluster_size, beta, decay))

    print("KERNEL_OK")
</pallas_src>

<mosaic_0001>
module attributes {stable_mosaic.version = 11 : i64} {
  func.func @_vq_kernel(%arg0: i32, %arg1: memref<32x32xf32, #tpu.memory_space<vmem>>, %arg2: memref<32x128xf32, #tpu.memory_space<vmem>>, %arg3: memref<128x32xf32, #tpu.memory_space<vmem>>, %arg4: memref<32x32xf32, #tpu.memory_space<vmem>>, %arg5: memref<1x1x32xi32, #tpu.memory_space<vmem>>, %arg6: memref<1x1x128xf32, #tpu.memory_space<vmem>>, %arg7: memref<1x1x1xf32, #tpu.memory_space<vmem>>) attributes {dimension_semantics = [#tpu.dimension_semantics<parallel>], iteration_bounds = array<i64: 1>, scalar_prefetch = 0 : i64, scratch_operands = 0 : i64, tpu.core_type = #tpu.core_type<tc>, window_params = [{transform_indices = @transform_0, window_bounds = array<i64: 32, 32>}, {pipeline_mode = #tpu.pipeline_mode<synchronous>, transform_indices = @transform_1, window_bounds = array<i64: 32, 128>}, {pipeline_mode = #tpu.pipeline_mode<synchronous>, transform_indices = @transform_2, window_bounds = array<i64: 128, 32>}, {transform_indices = @transform_3, window_bounds = array<i64: 32, 32>}, {transform_indices = @transform_4, window_bounds = array<i64: 1, 1, 32>}, {transform_indices = @transform_5, window_bounds = array<i64: 1, 1, 128>}, {transform_indices = @transform_6, window_bounds = array<i64: 1, 1, 1>}]} {
    %c0 = arith.constant 0 : index
    %c0_0 = arith.constant 0 : index
    %0 = vector.load %arg1[%c0, %c0_0] : memref<32x32xf32, #tpu.memory_space<vmem>>, vector<32x32xf32>
    %c0_1 = arith.constant 0 : index
    %c0_2 = arith.constant 0 : index
    %1 = vector.load %arg2[%c0_1, %c0_2] : memref<32x128xf32, #tpu.memory_space<vmem>>, vector<32x128xf32>
    %c0_3 = arith.constant 0 : index
    %c0_4 = arith.constant 0 : index
    %2 = vector.load %arg3[%c0_3, %c0_4] : memref<128x32xf32, #tpu.memory_space<vmem>>, vector<128x32xf32>
    %3 = arith.mulf %0, %0 : vector<32x32xf32>
    %cst = arith.constant dense<0.000000e+00> : vector<32xf32>
    %4 = vector.multi_reduction <add>, %3, %cst [1] : vector<32x32xf32> to vector<32xf32>
    %5 = vector.shape_cast %4 : vector<32xf32> to vector<32x1xf32>
    %6 = math.sqrt %5 : vector<32x1xf32>
    %cst_5 = arith.constant 9.99999996E-13 : f32
    %7 = vector.broadcast %cst_5 : f32 to vector<32x1xf32>
    %8 = arith.maximumf %6, %7 : vector<32x1xf32>
    %9 = arith.mulf %1, %1 : vector<32x128xf32>
    %cst_6 = arith.constant dense<0.000000e+00> : vector<128xf32>
    %10 = vector.multi_reduction <add>, %9, %cst_6 [0] : vector<32x128xf32> to vector<128xf32>
    %11 = vector.shape_cast %10 : vector<128xf32> to vector<1x128xf32>
    %cst_7 = arith.constant dense<0.000000e+00> : vector<32x128xf32>
    %12 = tpu.matmul %0, %1, %cst_7 {dimension_numbers = #tpu.dot_dimension_numbers<[1], [0], [0], [1], [0, 0, 1, 1], [], []>} : vector<32x32xf32>, vector<32x128xf32>, vector<32x128xf32> -> vector<32x128xf32>
    %13 = vector.broadcast %8 : vector<32x1xf32> to vector<32x128xf32>
    %14 = vector.broadcast %11 : vector<1x128xf32> to vector<32x128xf32>
    %15 = arith.mulf %13, %14 : vector<32x128xf32>
    %cst_8 = arith.constant 5.000000e-01 : f32
    %16 = vector.broadcast %cst_8 : f32 to vector<32x128xf32>
    %17 = arith.mulf %16, %15 : vector<32x128xf32>
    %18 = arith.subf %12, %17 : vector<32x128xf32>
    %19 = tpu.reduce_index %18 {axis = 1 : i32, kind = #tpu.reduction_kind<arg_max>} : vector<32x128xf32> -> vector<32xi32>
    %20 = vector.shape_cast %19 : vector<32xi32> to vector<1x1x32xi32>
    %c0_9 = arith.constant 0 : index
    %c0_10 = arith.constant 0 : index
    %c0_11 = arith.constant 0 : index
    %21 = vector.load %arg5[%c0_9, %c0_10, %c0_11] : memref<1x1x32xi32, #tpu.memory_space<vmem>>, vector<1x1x32xi32>
    tpu.vector_store %arg5[%c0_9, %c0_10, %c0_11], %20 {strides = array<i32>} : memref<1x1x32xi32, #tpu.memory_space<vmem>>, vector<1x1x32xi32>,
    %22 = tpu.iota {dimensions = array<i32: 1>} : vector<32x128xi32>
    %23 = vector.shape_cast %19 : vector<32xi32> to vector<32x1xi32>
    %24 = vector.broadcast %23 : vector<32x1xi32> to vector<32x128xi32>
    %25 = arith.cmpi eq, %22, %24 : vector<32x128xi32>
    %26 = arith.extui %25 : vector<32x128xi1> to vector<32x128xi32>
    %27 = arith.sitofp %26 : vector<32x128xi32> to vector<32x128xf32>
    %cst_12 = arith.constant dense<0.000000e+00> : vector<32x32xf32>
    %28 = tpu.matmul %27, %2, %cst_12 {dimension_numbers = #tpu.dot_dimension_numbers<[1], [0], [0], [1], [0, 0, 1, 1], [], []>} : vector<32x128xf32>, vector<128x32xf32>, vector<32x32xf32> -> vector<32x32xf32>
    %c0_13 = arith.constant 0 : index
    %c0_14 = arith.constant 0 : index
    %29 = vector.load %arg4[%c0_13, %c0_14] : memref<32x32xf32, #tpu.memory_space<vmem>>, vector<32x32xf32>
    tpu.vector_store %arg4[%c0_13, %c0_14], %28 {strides = array<i32>} : memref<32x32xf32, #tpu.memory_space<vmem>>, vector<32x32xf32>,
    %cst_15 = arith.constant dense<0xFF800000> : vector<32xf32>
    %30 = vector.multi_reduction <maximumf>, %18, %cst_15 [1] : vector<32x128xf32> to vector<32xf32>
    %31 = vector.shape_cast %30 : vector<32xf32> to vector<32x1xf32>
    %cst_16 = arith.constant 1.000000e+00 : f32
    %32 = vector.broadcast %cst_16 : f32 to vector<32x1xf32>
    %33 = arith.divf %32, %8 : vector<32x1xf32>
    %34 = arith.mulf %5, %33 : vector<32x1xf32>
    %35 = arith.mulf %34, %33 : vector<32x1xf32>
    %cst_17 = arith.constant 2.000000e+00 : f32
    %36 = vector.broadcast %cst_17 : f32 to vector<32x1xf32>
    %37 = arith.mulf %36, %31 : vector<32x1xf32>
    %38 = arith.mulf %37, %33 : vector<32x1xf32>
    %39 = arith.subf %35, %38 : vector<32x1xf32>
    %cst_18 = arith.constant dense<0.000000e+00> : vector<128xf32>
    %40 = vector.multi_reduction <add>, %27, %cst_18 [0] : vector<32x128xf32> to vector<128xf32>
    %41 = vector.shape_cast %40 : vector<128xf32> to vector<1x1x128xf32>
    %c0_19 = arith.constant 0 : index
    %c0_20 = arith.constant 0 : index
    %c0_21 = arith.constant 0 : index
    %42 = vector.load %arg6[%c0_19, %c0_20, %c0_21] : memref<1x1x128xf32, #tpu.memory_space<vmem>>, vector<1x1x128xf32>
    tpu.vector_store %arg6[%c0_19, %c0_20, %c0_21], %41 {strides = array<i32>} : memref<1x1x128xf32, #tpu.memory_space<vmem>>, vector<1x1x128xf32>,
    %43 = vector.shape_cast %39 : vector<32x1xf32> to vector<1x32x1xf32>
    %cst_22 = arith.constant dense<0.000000e+00> : vector<1xf32>
    %44 = vector.multi_reduction <add>, %43, %cst_22 [1, 2] : vector<1x32x1xf32> to vector<1xf32>
    %45 = vector.shape_cast %44 : vector<1xf32> to vector<1x1x1xf32>
    %46 = vector.extract %45[0, 0, 0] : f32 from vector<1x1x1xf32>
    %47 = vector.broadcast %46 : f32 to vector<1x1x1xf32>
    %c0_23 = arith.constant 0 : index
    %c0_24 = arith.constant 0 : index
    %c0_25 = arith.constant 0 : index
    %48 = vector.load %arg7[%c0_23, %c0_24, %c0_25] : memref<1x1x1xf32, #tpu.memory_space<vmem>>, vector<1x1x1xf32>
    tpu.vector_store %arg7[%c0_23, %c0_24, %c0_25], %47 {strides = array<i32>} : memref<1x1x1xf32, #tpu.memory_space<vmem>>, vector<1x1x1xf32>,
    return
  }
  func.func @transform_0(%arg0: i32) -> (i32, i32) {
    %c0_i32 = arith.constant 0 : i32
    %c0_i32_0 = arith.constant 0 : i32
    return %arg0, %c0_i32 : i32, i32
  }
  func.func @transform_1(%arg0: i32) -> (i32, i32) {
    %c0_i32 = arith.constant 0 : i32
    %c0_i32_0 = arith.constant 0 : i32
    %c0_i32_1 = arith.constant 0 : i32
    return %c0_i32, %c0_i32_0 : i32, i32
  }
  func.func @transform_2(%arg0: i32) -> (i32, i32) {
    %c0_i32 = arith.constant 0 : i32
    %c0_i32_0 = arith.constant 0 : i32
    %c0_i32_1 = arith.constant 0 : i32
    return %c0_i32, %c0_i32_0 : i32, i32
  }
  func.func @transform_3(%arg0: i32) -> (i32, i32) {
    %c0_i32 = arith.constant 0 : i32
    %c0_i32_0 = arith.constant 0 : i32
    return %arg0, %c0_i32 : i32, i32
  }
  func.func @transform_4(%arg0: i32) -> (i32, i32, i32) {
    %c0_i32 = arith.constant 0 : i32
    %c0_i32_0 = arith.constant 0 : i32
    %c0_i32_1 = arith.constant 0 : i32
    return %arg0, %c0_i32, %c0_i32_0 : i32, i32, i32
  }
  func.func @transform_5(%arg0: i32) -> (i32, i32, i32) {
    %c0_i32 = arith.constant 0 : i32
    %c0_i32_0 = arith.constant 0 : i32
    %c0_i32_1 = arith.constant 0 : i32
    return %arg0, %c0_i32, %c0_i32_0 : i32, i32, i32
  }
  func.func @transform_6(%arg0: i32) -> (i32, i32, i32) {
    %c0_i32 = arith.constant 0 : i32
    %c0_i32_0 = arith.constant 0 : i32
    %c0_i32_1 = arith.constant 0 : i32
    return %arg0, %c0_i32, %c0_i32_0 : i32, i32, i32
  }
}

</mosaic_0001>

<bundles_post_ra>
// kernel: norm_ema_vq_forward.1
= control target key start
LH: loop header
LB: loop body
LE: loop exit
PB: predicated region body
PF: predicated region fallthrough
CT: control target
= control target key end

     0   :  { %12 = vsyncpa [#allocation3], 0  ;;  %vm48_vm0 = vcmask 261120   ;;  %s901_s0 = inlined_call_operand.vmem [shape: f32[32,32], index: 0, kind: input, shape index: {}]   ;;  %s902_s1 = inlined_call_operand.vmem [shape: f32[32,128], index: 1, kind: input, shape index: {}]   ;;  %s903_s2 = inlined_call_operand.vmem [shape: f32[128,32], index: 2, kind: input, shape index: {}]   ;;  %s904_s3 = inlined_call_operand.hbm [shape: f32[32,32], index: 3, kind: output, shape index: {0}]   ;;  %s905_s4 = inlined_call_operand.hbm [shape: s32[1,1,32], index: 4, kind: output, shape index: {1}]   ;;  %s906_s5 = inlined_call_operand.vmem [shape: f32[1,1,128], index: 5, kind: output, shape index: {2}]   ;;  %s907_s6 = inlined_call_operand.hbm [shape: f32[1,1,1], index: 6, kind: output, shape index: {3}]  }
   0x1   :  { %v24_v0 = vld [vmem:[%s902_s1] sm:$0xff]  ;;  %v25_v1 = vld [vmem:[%s902_s1 + $0x8] sm:$0xff]  ;;  %v26_v2 = vld [vmem:[%s902_s1 + $0x10] sm:$0xff] }
   0x2   :  { %v93_v3 = vmul.f32 %v24_v0, %v24_v0  ;;  %v94_v4 = vmul.f32 %v25_v1, %v25_v1  ;;  %v558_v5 = vpack.c.bf16 %v25_v1, %v24_v0  ;;  %v27_v6 = vld [vmem:[%s902_s1 + $0x18] sm:$0xff]  ;;  %v95_v7 = vmul.f32 %v26_v2, %v26_v2  ;;  %v20_v8 = vld [vmem:[%s901_s0] sm:$0xff]  ;;  %v21_v9 = vld [vmem:[%s901_s0 + $0x8] sm:$0xff] }
   0x3   :  { %v562_v10 = vpack.c.bf16 %v27_v6, %v26_v2  ;;  %v44_v11 = vmul.f32 %v20_v8, %v20_v8  ;;  %514 = vmatprep.mubr.msk.f32.mxu0 %vm48_vm0, %v20_v8  ;;  %v22_v12 = vld [vmem:[%s901_s0 + $0x10] sm:$0xff]  ;;  %v23_v13 = vld [vmem:[%s901_s0 + $0x18] sm:$0xff]  ;;  %v45_v14 = vmul.f32 %v21_v9, %v21_v9 }
   0x4   :  { %13 = vsyncpa [#allocation5], 0  ;;  %v97_v15 = vadd.f32 %v94_v4, %v93_v3  ;;  %559 = vmatprep.subr.bf16.mxu0 %v558_v5  ;;  %v96_v16 = vmul.f32 %v27_v6, %v27_v6  ;;  %v46_v17 = vmul.f32 %v22_v12, %v22_v12  ;;  %v47_v18 = vmul.f32 %v23_v13, %v23_v13  ;;  %v28_v25 = vld [vmem:[%s903_s2] sm:$0xff]  ;;  %v29_v26 = vld [vmem:[%s903_s2 + $0x8] sm:$0xff]  ;;  %s695_s18 = smov [#allocation4]  }
   0x5   :  { %561 = vmatpush3.bf16.msra.mxu0 %v558_v5  ;;  %v49_v19 = vsel %vm48_vm0, %v44_v11, 0.0  ;;  %v52_v22 = vsel %vm48_vm0, %v45_v14, 0.0  ;;  %v30_v27 = vld [vmem:[%s903_s2 + $0x10] sm:$0xff]  ;;  %v566_v28 = vpack.c.bf16 %v29_v26, %v28_v25  ;;  %v31_v29 = vld [vmem:[%s903_s2 + $0x18] sm:$0xff]  ;;  %v32_v31 = vld [vmem:[%s903_s2 + $0x20] sm:$0xff]  ;;  %vm234_vm11 = vcmask 130112  }
   0x6   :  { %v98_v20 = vadd.f32 %v97_v15, %v95_v7  ;;  %563 = vmatprep.subr.bf16.mxu0 %v562_v10  ;;  %50 = vadd.xlane.f32.xlu0 %v49_v19  ;;  %v55_v21 = vsel %vm48_vm0, %v46_v17, 0.0  ;;  %v58_v24 = vsel %vm48_vm0, %v47_v18, 0.0  ;;  %v570_v30 = vpack.c.bf16 %v31_v29, %v30_v27  ;;  %v33_v32 = vld [vmem:[%s903_s2 + $0x28] sm:$0xff]  ;;  %v34_v34 = vld [vmem:[%s903_s2 + $0x30] sm:$0xff]  ;;  %v35_v35 = vld [vmem:[%s903_s2 + $0x38] sm:$0xff]  ;;  %s437_s19 = sshll.u32 %s695_s18, 4  ;;  %s438_s19 = int_to_ptr.vmem [resolvable:$true] %s437_s19 }
   0x7   :  { %56 = vadd.xlane.f32.xlu1 %v55_v21  ;;  %567 = vmatprep.subr.bf16.mxu1 %v566_v28  ;;  %v574_v33 = vpack.c.bf16 %v33_v32, %v32_v31  ;;  %v578_v36 = vpack.c.bf16 %v35_v35, %v34_v34  ;;  %v36_v37 = vld [vmem:[%s903_s2 + $0x40] sm:$0xff]  ;;  %v37_v38 = vld [vmem:[%s903_s2 + $0x48] sm:$0xff]  ;;  %v38_v40 = vld [vmem:[%s903_s2 + $0x50] sm:$0xff]  ;;  %vm241_vm12 = vcmask 195712   ;;  %vm248_vm13 = vcmask 261312   ;;  %s623_s20 = scalar_lea.vmem %s438_s19, 16  ;;  %p628_p1 = scmp.lt.s32.totalorder %s438_s19, %s438_s19 }
   0x8   :  { %v763_v23 = vadd.f32 %v98_v20, %v96_v16  ;;  %569 = vmatpush3.bf16.msra.mxu1 %v566_v28  ;;  %v582_v39 = vpack.c.bf16 %v37_v38, %v36_v37  ;;  %v39_v41 = vld [vmem:[%s903_s2 + $0x58] sm:$0xff]  ;;  %v40_v43 = vld [vmem:[%s903_s2 + $0x60] sm:$0xff]  ;;  %v41_v44 = vld [vmem:[%s903_s2 + $0x68] sm:$0xff]  ;;  %p624_p0 = scmp.ne.s32.totalorder %s438_s19, %s623_s20  ;;  %s627_s21 = scalar_lea.vmem %s438_s19, 32 }
   0x9   :  { %565 = vmatpush3.bf16.msra.mxu0 %v562_v10  ;;  %571 = vmatprep.subr.bf16.mxu1 %v570_v30  ;;  %v586_v42 = vpack.c.bf16 %v39_v41, %v38_v40  ;;  %v590_v45 = vpack.c.bf16 %v41_v44, %v40_v43  ;;  %v42_v46 = vld [vmem:[%s903_s2 + $0x70] sm:$0xff]  ;;  %v43_v47 = vld [vmem:[%s903_s2 + $0x78] sm:$0xff]  ;;  %v223_v41 = vlaneseq  ;;  %p629_p2 = scmp.lt.s32.totalorder %s627_s21, %s623_s20 }
   0xa   :  { %53 = vadd.xlane.f32.xlu0 %v52_v22  ;;  %v594_v48 = vpack.c.bf16 %v43_v47, %v42_v46  ;;  %v100_v7 = vrot.slane %v763_v23, 4 }
   0xb   :  { %59 = vadd.xlane.f32.xlu1 %v58_v24  ;;  %v226_v43 = vshrl.u32 %v223_v41, 7  ;;  %p630_p3 = por %p629_p2, %p628_p1 }
   0xc   :  { %515 = vmatmul.mubr.msk.f32.vlgmr.msra.gmra.mrb[0].mxu0 %vm48_vm0, %v21_v9  ;;  %573 = vmatpush3.bf16.msra.mxu1 %v570_v30  ;;  %v101_v8 = vadd.f32 %v100_v7, %v763_v23 }
   0xd   :  { %517 = vmatprep.mubr.msk.f32.mxu0 %vm48_vm0, %v22_v12  ;;  %575 = vmatprep.subr.bf16.mxu1 %v574_v33  ;;  %p631_p4 = pnand %p630_p3, %p624_p0 }
   0xe   :  { %v102_v10 = vrot.slane %v101_v8, 2 }
  0x10   :  { %518 = vmatmul.mubr.msk.f32.gmra.mrb[2].mxu0 %vm48_vm0, %v23_v13  ;;  %577 = vmatpush3.bf16.msra.mxu1 %v574_v33  ;;  %v103_v13 = vadd.f32 %v102_v10, %v101_v8 }
  0x11   :  { %579 = vmatprep.subr.bf16.mxu1 %v578_v36 }
  0x12   :  { %v104_v17 = vrot.slane %v103_v13, 1 }
  0x14   :  { %581 = vmatpush3.bf16.msra.mxu1 %v578_v36  ;;  %v105_v21 = vadd.f32 %v104_v17, %v103_v13 }
  0x15   :  { %583 = vmatprep.subr.bf16.mxu1 %v582_v39 }
  0x18   :  { %585 = vmatpush3.bf16.msra.mxu1 %v582_v39 }
  0x19   :  { %587 = vmatprep.subr.bf16.mxu1 %v586_v42 }
  0x1c   :  { %589 = vmatpush3.bf16.msra.mxu1 %v586_v42  ;;  %v224_v42 = vand.u32 127, %v223_v41 }
  0x1d   :  { %591 = vmatprep.subr.bf16.mxu1 %v590_v45 }
  0x1e   :  { %v229_v44 = vadd.s32 4294967288, %v224_v42  ;;  %v236_v46 = vadd.s32 4294967280, %v224_v42 }
  0x20   :  { %593 = vmatpush3.bf16.msra.mxu1 %v590_v45  ;;  %v243_v45 = vadd.s32 4294967272, %v224_v42  ;;  %v232_v47 = vsub.s32 %v229_v44, %v226_v43 }
  0x21   :  { %595 = vmatprep.subr.bf16.mxu1 %v594_v48 }
  0x24   :  { %597 = vmatpush3.bf16.msra.mxu1 %v594_v48  ;;  %v227_v48 = vsub.s32 %v224_v42, %v226_v43 }
  0x93   :  { %v51_v49 = vpop.xlane.xlu0 %50 }
  0x94   :  { %607 = vrsqrt.f32 %v51_v49  ;;  %v57_v50 = vpop.xlane.xlu1 %56  ;;  %vm63_vm1 = vcmp.eq.f32.partialorder %v51_v49, inf  ;;  %v66_v52 = vand.u32 2147483648, %v51_v49  ;;  %vm65_vm2 = vcmp.eq.f32.partialorder %v51_v49, 0.0 }
  0x95   :  { %609 = vrsqrt.f32 %v57_v50  ;;  %vm77_vm3 = vcmp.eq.f32.partialorder %v57_v50, inf  ;;  %v80_v55 = vand.u32 2147483648, %v57_v50  ;;  %vm79_vm4 = vcmp.eq.f32.partialorder %v57_v50, 0.0 }
  0x97   :  { %v829_v5 = vpop.xlane.xlu0 %53 }
  0x98   :  { %v832_v6 = vpop.xlane.xlu1 %59  ;;  %vm70_vm5 = vcmp.eq.f32.partialorder %v829_v5, inf  ;;  %v73_v14 = vand.u32 2147483648, %v829_v5  ;;  %vm72_vm6 = vcmp.eq.f32.partialorder %v829_v5, 0.0 }
  0x99   :  { %vm84_vm7 = vcmp.eq.f32.partialorder %v832_v6, inf  ;;  %v87_v19 = vand.u32 2147483648, %v832_v6  ;;  %vm86_vm8 = vcmp.eq.f32.partialorder %v832_v6, 0.0 }
  0x9e   :  { %v608_v51 = vpop.eup %607 }
  0x9f   :  { %v610_v53 = vpop.eup %609  ;;  %v62_v54 = vmul.f32 %v608_v51, %v51_v49 }
  0xa0   :  { %v76_v56 = vmul.f32 %v610_v53, %v57_v50  ;;  %v239_v53 = vsub.s32 %v236_v46, %v226_v43 }
  0xa1   :  { %v64_v57 = vsel %vm63_vm1, %v51_v49, %v62_v54  ;;  %vm250_vm1 = vcmask 253952  }
  0xa2   :  { %v67_v58 = vsel %vm65_vm2, %v66_v52, %v64_v57  ;;  %v78_v59 = vsel %vm77_vm3, %v57_v50, %v76_v56  ;;  %v246_v52 = vsub.s32 %v243_v45, %v226_v43  ;;  %vm399_vm2 = vcmask 7168  }
  0xa3   :  { %v89_v60 = vmax.f32 %v67_v58, 1e-12  ;;  %v81_v61 = vsel %vm79_vm4, %v80_v55, %v78_v59  ;;  %v693_v55 = vmov 0.0   ;;  %v694_v59 = vmov 1.0  }
  0xa4   :  { %v91_v62 = vmax.f32 %v81_v61, 1e-12 }
  0xa5   :  { %611 = vrcp.f32 %v89_v60  ;;  %v203_v25 = vmul.f32 %v105_v21, %v89_v60 }
  0xa6   :  { %613 = vrcp.f32 %v91_v62  ;;  %v205_v31 = vmul.f32 %v105_v21, %v91_v62 }
  0xa7   :  { %615 = vrsqrt.f32 %v829_v5  ;;  %v207_v30 = vmul.f32 0.5, %v203_v25 }
  0xa8   :  { %617 = vrsqrt.f32 %v832_v6  ;;  %v209_v37 = vmul.f32 0.5, %v205_v31 }
  0xaf   :  { %v817_v63 = vpop.eup %611 }
  0xb0   :  { %v819_v0 = vpop.eup %613  ;;  %v369_v1 = vmul.f32 %v817_v63, %v51_v49 }
  0xb1   :  { %v371_v2 = vmul.f32 %v819_v0, %v57_v50  ;;  %v616_v9 = vpop.eup %615 }
  0xb2   :  { %v824_v3 = vmul.f32 %v817_v63, %v369_v1  ;;  %v69_v11 = vmul.f32 %v616_v9, %v829_v5  ;;  %v618_v12 = vpop.eup %617 }
  0xb3   :  { %v827_v4 = vmul.f32 %v819_v0, %v371_v2  ;;  %v83_v16 = vmul.f32 %v618_v12, %v832_v6 }
  0xb4   :  { %v71_v15 = vsel %vm70_vm5, %v829_v5, %v69_v11 }
  0xb5   :  { %v74_v18 = vsel %vm72_vm6, %v73_v14, %v71_v15  ;;  %v85_v20 = vsel %vm84_vm7, %v832_v6, %v83_v16 }
  0xb6   :  { %v90_v22 = vmax.f32 %v74_v18, 1e-12  ;;  %v88_v23 = vsel %vm86_vm8, %v87_v19, %v85_v20 }
  0xb7   :  { %v92_v26 = vmax.f32 %v88_v23, 1e-12 }
  0xb8   :  { %v204_v24 = vmul.f32 %v105_v21, %v90_v22  ;;  %619 = vrcp.f32 %v90_v22 }
  0xb9   :  { %v206_v28 = vmul.f32 %v105_v21, %v92_v26  ;;  %621 = vrcp.f32 %v92_v26 }
  0xba   :  { %v208_v27 = vmul.f32 0.5, %v204_v24 }
  0xbb   :  { %v210_v35 = vmul.f32 0.5, %v206_v28 }
  0xc2   :  { %v620_v51 = vpop.eup %619 }
  0xc3   :  { %v370_v62 = vmul.f32 %v620_v51, %v829_v5  ;;  %v622_v13 = vpop.eup %621 }
  0xc4   :  { %v372_v23 = vmul.f32 %v622_v13, %v832_v6 }
  0xc5   :  { %v374_v19 = vmul.f32 %v620_v51, %v370_v62 }
  0xdf   :  { %v516_v29 = vpop.f32.mrb[0].mxu0 }
  0xe0   :  { %v212_v32 = vsub.f32 %v516_v29, %v208_v27  ;;  %v184_v33 = vpop.f32.mrb[1].mxu0 }
  0xe1   :  { %v211_v34 = vsub.f32 %v184_v33, %v207_v30 }
  0xe2   :  { %217 = vmax.index.xlane.f32.xlu1 %v212_v32 }
  0xe3   :  { %v519_v36 = vpop.f32.mrb[2].mxu0  ;;  %215 = vmax.index.xlane.f32.xlu0 %v211_v34 }
  0xe4   :  { %v214_v38 = vsub.f32 %v519_v36, %v210_v35  ;;  %v194_v39 = vpop.f32.mrb[3].mxu0 }
  0xe5   :  { %v213_v40 = vsub.f32 %v194_v39, %v209_v37 }
  0xe6   :  { %221 = vmax.index.xlane.f32.xlu1 %v214_v38 }
  0xe7   :  { %219 = vmax.index.xlane.f32.xlu0 %v213_v40 }
  0xea   :  { %355 = vmax.xlane.f32.xlu1 %v212_v32 }
  0xeb   :  { %353 = vmax.xlane.f32.xlu0 %v211_v34  ;;  %v376_v34 = vmul.f32 %v622_v13, %v372_v23 }
  0xee   :  { %359 = vmax.xlane.f32.xlu1 %v214_v38 }
  0xef   :  { %357 = vmax.xlane.f32.xlu0 %v213_v40 }
 0x16f   :  { %v218_v49 = vpop.xlane.xlu1 %217 }
 0x170   :  { %vm253_vm9 = vcmp.eq.s32.totalorder %v224_v42, %v218_v49  ;;  %v216_v50 = vpop.xlane.xlu0 %215  ;;  %v233_v54 = vrot.slane %v218_v49, %v232_v47 }
 0x171   :  { %vm252_vm10 = vcmp.eq.s32.totalorder %v224_v42, %v216_v50  ;;  %v471_v56 = vsel %vm253_vm9, 1.0, %v693_v55  ;;  %v228_v57 = vrot.slane %v216_v50, %v227_v48 }
 0x172   :  { %v470_v58 = vsel %vm252_vm10, 1.0, %v693_v55  ;;  %552 = vmatprep.mubr.msk.f32.mxu1 %vm252_vm10, %v694_v59 }
 0x173   :  { %v222_v60 = vpop.xlane.xlu1 %221  ;;  %553 = vmatmul.mubr.msk.f32.vlgmr.msra.gmra.mrb[0].mxu1 %vm253_vm9, %v694_v59  ;;  %v389_v1 = vadd.f32 %v471_v56, %v470_v58  ;;  %v235_v7 = vsel %vm234_vm11, %v233_v54, %v228_v57 }
 0x174   :  { %v220_v61 = vpop.xlane.xlu0 %219  ;;  %vm255_vm14 = vcmp.eq.s32.totalorder %v224_v42, %v222_v60  ;;  %v247_v8 = vrot.slane %v222_v60, %v246_v52 }
 0x175   :  { %v240_v2 = vrot.slane %v220_v61, %v239_v53  ;;  %vm254_vm15 = vcmp.eq.s32.totalorder %v224_v42, %v220_v61  ;;  %v473_v14 = vsel %vm255_vm14, 1.0, %v693_v55 }
 0x176   :  { %v472_v9 = vsel %vm254_vm15, 1.0, %v693_v55  ;;  %555 = vmatprep.mubr.msk.f32.mxu1 %vm254_vm15, %v694_v59 }
 0x177   :  { %v390_v10 = vadd.f32 %v472_v9, %v389_v1  ;;  %v356_v11 = vpop.xlane.xlu1 %355  ;;  %556 = vmatmul.mubr.msk.f32.gmra.mrb[2].mxu1 %vm255_vm14, %v694_v59  ;;  %v242_v12 = vsel %vm241_vm12, %v240_v2, %v235_v7 }
 0x178   :  { %v378_v15 = vmul.f32 2.0, %v356_v11  ;;  %v354_v16 = vpop.xlane.xlu0 %353  ;;  %v249_v5 = vsel %vm248_vm13, %v247_v8, %v242_v12 }
 0x179   :  { %v391_v17 = vadd.f32 %v473_v14, %v390_v10  ;;  %v377_v18 = vmul.f32 2.0, %v354_v16  ;;  %251 = vst.msk [vmem:[#allocation4] sm:$0x1] %vm250_vm1, %v249_v5 }
 0x17a   :  { %v382_v20 = vmul.f32 %v620_v51, %v378_v15 }
 0x17b   :  { %v392_v21 = vrot.slane %v391_v17, 4  ;;  %v381_v22 = vmul.f32 %v817_v63, %v377_v18  ;;  %v360_v24 = vpop.xlane.xlu1 %359 }
 0x17c   :  { %v386_v25 = vsub.f32 %v374_v19, %v382_v20  ;;  %v380_v26 = vmul.f32 2.0, %v360_v24  ;;  %v358_v27 = vpop.xlane.xlu0 %357 }
 0x17d   :  { %v393_v28 = vadd.f32 %v392_v21, %v391_v17  ;;  %v385_v29 = vsub.f32 %v824_v3, %v381_v22  ;;  %v379_v30 = vmul.f32 2.0, %v358_v27 }
 0x17e   :  { %v384_v31 = vmul.f32 %v622_v13, %v380_v26  ;;  %v401_v32 = vsel %vm399_vm2, %v386_v25, 0.0 }
 0x17f   :  { %v394_v33 = vrot.slane %v393_v28, 2  ;;  %v383_v35 = vmul.f32 %v819_v0, %v379_v30  ;;  %v400_v63 = vsel %vm399_vm2, %v385_v29, 0.0 }
 0x180   :  { %v402_v36 = vadd.f32 %v401_v32, %v400_v63  ;;  %v388_v37 = vsub.f32 %v376_v34, %v384_v31 }
 0x181   :  { %v395_v6 = vadd.f32 %v394_v33, %v393_v28  ;;  %v387_v38 = vsub.f32 %v827_v4, %v383_v35 }
 0x182   :  { %v405_v42 = vsel %vm399_vm2, %v388_v37, 0.0 }
 0x183   :  { %v396_v39 = vrot.slane %v395_v6, 1  ;;  %v403_v40 = vsel %vm399_vm2, %v387_v38, 0.0 }
 0x184   :  { %v404_v41 = vadd.f32 %v403_v40, %v402_v36 }
 0x185   :  { %v397_v3 = vadd.f32 %v396_v39, %v395_v6 }
 0x186   :  { %v406_v43 = vadd.f32 %v405_v42, %v404_v41 }
 0x187   :  { %398 = vst [vmem:[%s906_s5] sm:$0x1] %v397_v3 }
 0x188   :  { %407 = vadd.xlane.f32.xlu0 %v406_v43 }
 0x189   :  { %634 = shalt.err (!%p631_p4)
}
 0x18a   :  { %s635_s24 = scalar_lea.hbm %s905_s4, 16 }
 0x18b   :  { %p636_p5 = scmp.ne.s32.totalorder %s905_s4, %s635_s24  ;;  %p639_p6 = scmp.lt.u32.totalorder %s635_s24, %s905_s4 }
 0x18d   :  { %p641_p7 = pnand %p639_p6, %p636_p5 }
 0x18f   :  { %644 = shalt.err (!%p641_p7)
}
 0x190   :  { %440 = dma.vmem_to_hbm [thread:$0]  %s438_s19, 16, %s905_s4, [#allocation5]  }
 0x191   :  { %s696_s30 = smov [#allocation2]  }
 0x192   :  { %s424_s7 = sshll.u32 %s696_s30, 4  ;;  %s425_s7 = int_to_ptr.vmem [resolvable:$true] %s424_s7 }
 0x193   :  { %s645_s4 = scalar_lea.vmem %s425_s7, 512  ;;  %p650_p9 = scmp.lt.s32.totalorder %s425_s7, %s425_s7 }
 0x194   :  { %p646_p8 = scmp.ne.s32.totalorder %s425_s7, %s645_s4  ;;  %p651_p10 = scmp.lt.s32.totalorder %s645_s4, %s645_s4 }
 0x196   :  { %p652_p11 = por %p651_p10, %p650_p9 }
 0x198   :  { %p653_p12 = pnand %p652_p11, %p646_p8 }
 0x215   :  { %v408_v0 = vpop.xlane.xlu0 %407 }
 0x216   :  { %v409_v4 = vrot.slane %v408_v0, 4 }
 0x218   :  { %v410_v44 = vadd.f32 %v409_v4, %v408_v0 }
 0x21a   :  { %v411_v45 = vrot.slane %v410_v44, 2 }
 0x21c   :  { %v412_v46 = vadd.f32 %v411_v45, %v410_v44 }
 0x21e   :  { %v413_v47 = vrot.slane %v412_v46, 1 }
 0x220   :  { %v414_v48 = vadd.f32 %v413_v47, %v412_v46 }
 0x222   :  { %598 = vpush %v414_v48 }
 0x246   :  { %v554_v49 = vpop.f32.mrb[0].mxu1 }
 0x247   :  { %350 = vst.msk [vmem:[#allocation2 + $0x8] sm:$0xff] %vm48_vm0, %v554_v49  ;;  %v330_v50 = vpop.f32.mrb[1].mxu1 }
 0x248   :  { %349 = vst.msk [vmem:[#allocation2] sm:$0xff] %vm48_vm0, %v330_v50 }
 0x24a   :  { %v557_v51 = vpop.f32.mrb[2].mxu1 }
 0x24b   :  { %352 = vst.msk [vmem:[#allocation2 + $0x18] sm:$0xff] %vm48_vm0, %v557_v51  ;;  %v340_v52 = vpop.f32.mrb[3].mxu1 }
 0x24c   :  { %351 = vst.msk [vmem:[#allocation2 + $0x10] sm:$0xff] %vm48_vm0, %v340_v52 }
 0x24d   :  { %656 = shalt.err (!%p653_p12)
}
 0x24e   :  { %s657_s10 = scalar_lea.hbm %s904_s3, 512 }
 0x24f   :  { %p658_p13 = scmp.ne.s32.totalorder %s904_s3, %s657_s10  ;;  %p661_p0 = scmp.lt.u32.totalorder %s657_s10, %s904_s3 }
 0x251   :  { %p663_p1 = pnand %p661_p0, %p658_p13 }
 0x253   :  { %666 = shalt.err (!%p663_p1)
}
 0x254   :  { %s697_s13 = smov 128   ;;  %s698_s14 = smov 8   ;;  %vm417_vm0 = vcmask 0  }
 0x255   :  { %430 = dma.vmem_to_hbm [thread:$0]  %s425_s7, 512, %s904_s3, [#allocation3], %s697_s13, %s697_s13, %s698_s14  }
 0x256   :  { %s699_s2 = smov [#allocation6]   ;;  %s599_s18 = spop %598 }
 0x257   :  { %s449_s17 = sshll.u32 %s699_s2, 4  ;;  %v416_v53 = vstv %s599_s18  ;;  %s450_s17 = int_to_ptr.vmem [resolvable:$true] %s449_s17 }
 0x258   :  { %418 = vst.msk [vmem:[#allocation6] sm:$0x1] %vm417_vm0, %v416_v53  ;;  %s667_s19 = scalar_lea.vmem %s450_s17, 16  ;;  %s671_s20 = scalar_lea.vmem %s450_s17, 32 }
 0x259   :  { %p668_p2 = scmp.ne.s32.totalorder %s450_s17, %s667_s19  ;;  %p672_p3 = scmp.lt.s32.totalorder %s450_s17, %s450_s17 }
 0x25a   :  { %p673_p4 = scmp.lt.s32.totalorder %s671_s20, %s667_s19 }
 0x25c   :  { %p674_p5 = por %p673_p4, %p672_p3 }
 0x25e   :  { %p675_p6 = pnand %p674_p5, %p668_p2 }
 0x260   :  { %678 = shalt.err (!%p675_p6)
}
 0x261   :  { %s679_s23 = scalar_lea.hbm %s907_s6, 16 }
 0x262   :  { %p680_p7 = scmp.ne.s32.totalorder %s907_s6, %s679_s23  ;;  %p683_p8 = scmp.lt.u32.totalorder %s679_s23, %s907_s6 }
 0x264   :  { %p685_p9 = pnand %p683_p8, %p680_p7 }
 0x266   :  { %688 = shalt.err (!%p685_p9)
}
 0x267   :  { %452 = dma.vmem_to_hbm [thread:$0]  %s450_s17, 16, %s907_s6, [#allocation5]  }
 0x268   :  { %689 = dma.done.wait [#allocation3], 512  }
 0x269   :  { %690 = vsyncadd [#allocation3], 4294966784 }
 0x26a   :  { %691 = dma.done.wait [#allocation5], 32  }
 0x26b   :  { %692 = vsyncadd [#allocation5], 4294967264 }
 0x26c   :  { %464 = vsyncpa [#allocation3], 1 }
 0x26d   :  { %465 = vsyncpa [#allocation5], 1 }

</bundles_post_ra>
